<compile_context>
chip_gen: v7x
topology: tpu7x:2x2x1
jax: 0.10.0
libtpu: 0.0.40
codegen_flags: <defaults>
</compile_context>

<pallas_src>
import functools
import math

import jax
import jax.numpy as jnp
import numpy as np
from jax import lax
from jax.experimental import pallas as pl
from jax.experimental.pallas import tpu as pltpu


# --------------------------------------------------------------------------------------
# Kernel
# --------------------------------------------------------------------------------------
def _quantlinear_kernel(x_ref, qw_ref, sc_ref, sz_ref, o_ref, acc_ref,
                        *, bits, maxq, per_row, mxu_dtype):
    """One (bm, bn) output tile, accumulating over the K grid axis (axis 2).

    qweight is unpacked with `pack` STATIC shift/mask extractions; plane j holds the weight
    rows whose in-word bit position is j.  The wrapper permutes x's K axis (and the per-row
    scale slabs) to the same plane-major order, so the planes are simply concatenated.
    """
    pack = 32 // bits
    kp, bn = qw_ref.shape                                              # kp = bk // pack

    @pl.when(pl.program_id(2) == 0)
    def _init():
        acc_ref[...] = jnp.zeros_like(acc_ref)

    qw_u = pltpu.bitcast(qw_ref[...], jnp.uint32)                      # (kp, bn)

    if not per_row:
        # Per-group scales: expand (bg, bn) -> (kp, bn) once; shared by all `pack` planes
        # (group membership only depends on the within-plane row index r).
        sc = sc_ref[0]                                                 # (bg, bn) f32
        sz = sz_ref[0]
        bg = sc.shape[0]
        rep = kp // bg
        if rep > 1:
            sc = jnp.reshape(jnp.broadcast_to(sc[:, None, :], (bg, rep, bn)), (kp, bn))
            sz = jnp.reshape(jnp.broadcast_to(sz[:, None, :], (bg, rep, bn)), (kp, bn))

    planes = []
    for j in range(pack):                                              # static unroll
        w_j = ((qw_u >> (bits * j)) & jnp.uint32(maxq)).astype(jnp.float32)
        if per_row:
            sc_j = sc_ref[0, j * kp:(j + 1) * kp, :]                   # plane-major rows
            sz_j = sz_ref[0, j * kp:(j + 1) * kp, :]
        else:
            sc_j, sz_j = sc, sz
        planes.append((w_j * sc_j - sz_j).astype(mxu_dtype))           # W = s*w - s*(z+1)
    w_deq = jnp.concatenate(planes, axis=0)                            # (bk, bn) plane-major

    acc_ref[...] += jnp.dot(x_ref[...], w_deq, preferred_element_type=jnp.float32)

    @pl.when(pl.program_id(2) == pl.num_programs(2) - 1)
    def _finalize():
        o_ref[...] = acc_ref[...].astype(o_ref.dtype)


# --------------------------------------------------------------------------------------
# Wrapper
# --------------------------------------------------------------------------------------
def _round_up(x, m):
    return ((x + m - 1) // m) * m


def _choose_bn(N, block_n):
    """Largest multiple-of-128 divisor of N <= block_n; prefer >= 2 N blocks (v7x megacore)."""
    if N % 128 != 0:
        return N
    best = None
    cand = (min(block_n, N) // 128) * 128
    while cand >= 128:
        if N % cand == 0:
            if best is None:
                best = cand
            if N // cand >= 2:
                return cand
        cand -= 128
    return best if best is not None else N


def _choose_bk(K, block_k, pack, groupsize, canonical):
    if K <= block_k:
        return K
    best = None
    cand = (min(block_k, K) // 128) * 128
    while cand >= 128:
        if K % cand == 0 and cand % pack == 0:
            aligned = (not canonical) or (cand % groupsize == 0) or (groupsize % cand == 0)
            if aligned:
                return cand
            if best is None:
                best = cand          # divides K but breaks group alignment -> per-row fallback
        cand -= 128
    return best if best is not None else K


def quant_linear_forward(x, qweight, scales, qzeros, g_idx, bias, *,
                         bits, groupsize, canonical=None,
                         block_m=256, block_n=512, block_k=1024,
                         mxu_dtype=jnp.float32,
                         vmem_limit_bytes=48 * 1024 * 1024):
    """Forward pass equivalent to QuantLinear.forward (output dtype float16).

    `canonical` says whether g_idx == arange(K)//groupsize (no act_order).  Pass it explicitly
    when calling under jit; if None, it is auto-detected from a concrete g_idx on the host.
    """
    if bits not in (2, 4, 8):
        raise NotImplementedError(
            "Only 2, 4, 8 bits are supported (3-bit GPTQ uses a different packing).")
    pack = 32 // bits
    maxq = (1 << bits) - 1

    K = x.shape[-1]
    N = qweight.shape[1]
    if K % pack != 0 or qweight.shape[0] != K // pack:
        raise ValueError("qweight shape inconsistent with x / bits.")
    out_shape = x.shape[:-1] + (N,)
    groupsize = K if groupsize in (-1, None) else groupsize

    # custom_fwd(cast_inputs=torch.float16): round activations through fp16, then carry them
    # in mxu_dtype (f32 by default so the matmul matches the fp16 reference; bf16 is an opt-in
    # fast path that halves activation DMA on v6e/v7x at some accuracy cost).
    x2 = x.reshape(-1, K).astype(jnp.float16).astype(mxu_dtype)
    M = x2.shape[0]

    # ---- tile sizes (per-step footprint is a few MiB -> fits every generation's VMEM) ----
    bm = min(block_m, _round_up(M, 8))
    Mp = _round_up(M, bm)
    bn = _choose_bn(N, block_n)

    if canonical is None:
        try:
            g_np = np.asarray(jax.device_get(g_idx)).astype(np.int64).reshape(-1)
        except Exception as e:        # g_idx is a tracer (jit) -> demand an explicit flag
            raise ValueError(
                "g_idx is not concrete (tracing under jit?); pass canonical=True/False "
                "explicitly — it is a property of the packed checkpoint, not of the data."
            ) from e
        canonical = bool(np.array_equal(g_np, np.arange(K) // groupsize))

    bk = _choose_bk(K, block_k, pack, groupsize, canonical)
    Kt = K // bk
    kp = bk // pack

    if Mp != M:
        x2 = jnp.pad(x2, ((0, Mp - M), (0, 0)))

    # Plane-major K permutation: the kernel unpacks qweight with `pack` static shifts and
    # concatenates the planes, which reorders K within each bk tile as
    #     new = j*kp + r   <-   old = r*pack + j.
    # Permute x's K axis identically (the reduction order over K is free).
    x2 = x2.reshape(Mp, Kt, kp, pack).transpose(0, 1, 3, 2).reshape(Mp, K)

    # ---- unpack qzeros once over the tiny (G, N) array; fold the GPTQ "+1": s*(z+1) ----
    sc_f = scales.astype(jnp.float32)                                   # (G, N)
    qz_u = lax.bitcast_convert_type(qzeros, jnp.uint32)                 # (G, N // pack)
    ncol = np.arange(N) // pack
    nshift = jnp.asarray((bits * (np.arange(N) % pack)).astype(np.uint32))
    z = (qz_u[:, ncol] >> nshift[None, :]) & jnp.uint32(maxq)           # (G, N) lane-dense
    szero = sc_f * (z.astype(jnp.float32) + 1.0)

    # ---- per-K-tile scale slabs, shape (Kt, bg, N) ----
    fast = (canonical and K % groupsize == 0 and groupsize % pack == 0
            and (bk % groupsize == 0 or groupsize % bk == 0))
    if fast and bk % groupsize == 0:
        bg = bk // groupsize                       # K tile covers bg whole groups
        sc_t = sc_f.reshape(Kt, bg, N)
        sz_t = szero.reshape(Kt, bg, N)
        per_row = False
    elif fast:                                     # groupsize % bk == 0: tile inside one group
        bg = 1
        gid = (np.arange(Kt) * bk) // groupsize
        sc_t = sc_f[gid][:, None, :]
        sz_t = szero[gid][:, None, :]
        per_row = False
    else:
        # act_order / misaligned fallback: per-K-row scales, permuted to plane-major order.
        # TODO(synk): replace with an in-kernel gather over scalar-prefetched g_idx to avoid
        # streaming two (K, N) f32 slabs from HBM.
        bg = bk
        gi = jnp.asarray(g_idx, jnp.int32).reshape(Kt, kp, pack).transpose(0, 2, 1).reshape(K)
        sc_t = sc_f[gi].reshape(Kt, bk, N)
        sz_t = szero[gi].reshape(Kt, bk, N)
        per_row = True

    kernel = functools.partial(_quantlinear_kernel, bits=bits, maxq=maxq,
                               per_row=per_row, mxu_dtype=mxu_dtype)

    out = pl.pallas_call(
        kernel,
        out_shape=jax.ShapeDtypeStruct((Mp, N), jnp.float32),
        grid_spec=pltpu.PrefetchScalarGridSpec(
            num_scalar_prefetch=0,
            # N leads so a 2-TC chip (v7x megacore) splits the packed-weight stream between
            # cores; K (the reduction) is innermost so the f32 accumulator stays resident.
            grid=(N // bn, Mp // bm, Kt),
            in_specs=[
                pl.BlockSpec((bm, bk), lambda j, i, k: (i, k)),            # x (plane-major K)
                pl.BlockSpec((kp, bn), lambda j, i, k: (k, j)),            # packed qweight
                pl.BlockSpec((1, bg, bn), lambda j, i, k: (k, 0, j)),      # scales slab
                pl.BlockSpec((1, bg, bn), lambda j, i, k: (k, 0, j)),      # s*(z+1) slab
            ],
            out_specs=pl.BlockSpec((bm, bn), lambda j, i, k: (i, j)),
            scratch_shapes=[pltpu.VMEM((bm, bn), jnp.float32)],            # f32 accumulator
        ),
        compiler_params=pltpu.CompilerParams(
            dimension_semantics=("parallel", "parallel", "arbitrary"),
            vmem_limit_bytes=vmem_limit_bytes,
        ),
    )(x2, qweight, sc_t, sz_t)

    out = out[:M].astype(jnp.float16)                  # matmul248 returns float16
    if bias is not None:
        out = out + bias.astype(jnp.float16)           # QuantLinear.forward: fp16 bias add
    return out.reshape(out_shape)


# --------------------------------------------------------------------------------------
# Reference + self-test
# --------------------------------------------------------------------------------------
def _reference(x, qweight, scales, qzeros, g_idx, bias, bits):
    """Pure numpy reference of the dequant + matmul semantics (f32 accumulate, fp16 out)."""
    pack = 32 // bits
    maxq = np.uint32(2 ** bits - 1)
    K = x.shape[-1]
    qw = np.asarray(qweight).view(np.uint32)
    N = qw.shape[1]
    kshift = (bits * (np.arange(K) % pack)).astype(np.uint32)
    w = ((qw[np.arange(K) // pack] >> kshift[:, None]) & maxq).astype(np.float32)
    qz = np.asarray(qzeros).view(np.uint32)
    nshift = (bits * (np.arange(N) % pack)).astype(np.uint32)
    z = ((qz[:, np.arange(N) // pack] >> nshift[None, :]) & maxq).astype(np.float32) + 1.0
    g = np.asarray(g_idx)
    sc = np.asarray(scales).astype(np.float32)
    wdeq = sc[g] * (w - z[g])
    x2 = np.asarray(x).reshape(-1, K).astype(np.float16).astype(np.float32)
    out = (x2 @ wdeq).astype(np.float16)
    if bias is not None:
        out = out + np.asarray(bias).astype(np.float16)
    return out.reshape(x.shape[:-1] + (N,))


def _pack_rows(int_mat, bits):
    pack = 32 // bits
    out = np.zeros((int_mat.shape[0] // pack, int_mat.shape[1]), dtype=np.uint32)
    for j in range(pack):
        out |= int_mat[j::pack].astype(np.uint32) << np.uint32(bits * j)
    return jnp.asarray(out.view(np.int32))


def _pack_cols(int_mat, bits):
    pack = 32 // bits
    out = np.zeros((int_mat.shape[0], int_mat.shape[1] // pack), dtype=np.uint32)
    for j in range(pack):
        out |= int_mat[:, j::pack].astype(np.uint32) << np.uint32(bits * j)
    return jnp.asarray(out.view(np.int32))


if __name__ == "__main__":
    def run_case(name, bits, groupsize, x_shape, act_order, with_bias, key):
        infeatures = x_shape[-1]
        outfeatures = 128
        maxq = 2 ** bits - 1
        gs = infeatures if groupsize == -1 else groupsize
        G = math.ceil(infeatures / gs)

        kx, kw, kz, ks, kb, kperm = jax.random.split(key, 6)
        w_int = np.asarray(jax.random.randint(kw, (infeatures, outfeatures), 0, maxq + 1),
                           dtype=np.uint32)
        z_int = np.asarray(jax.random.randint(kz, (G, outfeatures), 0, maxq + 1),
                           dtype=np.uint32)
        qweight = _pack_rows(w_int, bits)                     # (K // (32/bits), N) int32
        qzeros = _pack_cols(z_int, bits)                      # (G, N // (32/bits)) int32
        scales = jax.random.uniform(ks, (G, outfeatures), minval=0.01, maxval=0.1,
                                    dtype=jnp.float32).astype(jnp.float16)
        bias = (jax.random.normal(kb, (outfeatures,), dtype=jnp.float32).astype(jnp.float16)
                if with_bias else None)
        if act_order:
            perm = np.asarray(jax.random.permutation(kperm, infeatures))
            g_idx = jnp.asarray((perm // gs).astype(np.int32))
        else:
            g_idx = jnp.asarray(np.arange(infeatures) // gs, dtype=jnp.int32)

        x = jax.random.normal(kx, x_shape, dtype=jnp.float32)
        out = jax.block_until_ready(
            quant_linear_forward(x, qweight, scales, qzeros, g_idx, bias,
                                 bits=bits, groupsize=groupsize))
        ref = _reference(x, qweight, scales, qzeros, g_idx, bias, bits)
        assert out.shape == ref.shape, (name, out.shape, ref.shape)
        assert out.dtype == jnp.float16, (name, out.dtype)
        np.testing.assert_allclose(np.asarray(out, np.float32), np.asarray(ref, np.float32),
                                   rtol=1e-2, atol=1e-2, err_msg=name)

    key = jax.random.PRNGKey(0)
    k1, k2, k3 = jax.random.split(key, 3)
    # 1) canonical g_idx (no act_order), 4-bit, groupsize 32, M = 2*4 = 8
    run_case("canonical_4bit", 4, 32, (2, 4, 64), act_order=False, with_bias=True, key=k1)
    # 2) act_order-style permuted g_idx (per-row fallback) + M not a tile multiple
    run_case("act_order_4bit", 4, 32, (3, 5, 64), act_order=True, with_bias=True, key=k2)
    # 3) 8-bit, groupsize = -1 (single group), no bias
    run_case("onegroup_8bit", 8, -1, (2, 3, 64), act_order=False, with_bias=False, key=k3)

    print("KERNEL_OK")
</pallas_src>

<mosaic_0001>
module attributes {stable_mosaic.version = 11 : i64} {
  func.func @_quantlinear_kernel(%arg0: i32, %arg1: i32, %arg2: i32, %arg3: memref<8x64xf32, #tpu.memory_space<vmem>>, %arg4: memref<8x128xi32, #tpu.memory_space<vmem>>, %arg5: memref<1x2x128xf32, #tpu.memory_space<vmem>>, %arg6: memref<1x2x128xf32, #tpu.memory_space<vmem>>, %arg7: memref<8x128xf32, #tpu.memory_space<vmem>>, %arg8: memref<8x128xf32, #tpu.memory_space<vmem>>) attributes {dimension_semantics = [#tpu.dimension_semantics<parallel>, #tpu.dimension_semantics<parallel>, #tpu.dimension_semantics<arbitrary>], iteration_bounds = array<i64: 1, 1, 1>, scalar_prefetch = 0 : i64, scratch_operands = 1 : i64, tpu.core_type = #tpu.core_type<tc>, window_params = [{transform_indices = @transform_0, window_bounds = array<i64: 8, 64>}, {transform_indices = @transform_1, window_bounds = array<i64: 8, 128>}, {transform_indices = @transform_2, window_bounds = array<i64: 1, 2, 128>}, {transform_indices = @transform_3, window_bounds = array<i64: 1, 2, 128>}, {transform_indices = @transform_4, window_bounds = array<i64: 8, 128>}]} {
    %c0_i32 = arith.constant 0 : i32
    %0 = arith.cmpi eq, %arg2, %c0_i32 : i32
    %1 = arith.extui %0 : i1 to i32
    %c0_i32_0 = arith.constant 0 : i32
    %2 = arith.cmpi ne, %1, %c0_i32_0 : i32
    scf.if %2 {
      %cst_24 = arith.constant 0.000000e+00 : f32
      %82 = vector.broadcast %cst_24 : f32 to vector<8x128xf32>
      %c0_25 = arith.constant 0 : index
      %c0_26 = arith.constant 0 : index
      %83 = vector.load %arg8[%c0_25, %c0_26] : memref<8x128xf32, #tpu.memory_space<vmem>>, vector<8x128xf32>
      tpu.vector_store %arg8[%c0_25, %c0_26], %82 {strides = array<i32>} : memref<8x128xf32, #tpu.memory_space<vmem>>, vector<8x128xf32>,
    } else {
    }
    %c0 = arith.constant 0 : index
    %c0_1 = arith.constant 0 : index
    %3 = vector.load %arg4[%c0, %c0_1] : memref<8x128xi32, #tpu.memory_space<vmem>>, vector<8x128xi32>
    %4 = tpu.bitcast %3 : vector<8x128xi32> -> vector<8x128xi32>
    %c0_2 = arith.constant 0 : index
    %c0_3 = arith.constant 0 : index
    %c0_4 = arith.constant 0 : index
    %5 = vector.load %arg5[%c0_2, %c0_3, %c0_4] : memref<1x2x128xf32, #tpu.memory_space<vmem>>, vector<1x2x128xf32>
    %6 = vector.shape_cast %5 : vector<1x2x128xf32> to vector<2x128xf32>
    %c0_5 = arith.constant 0 : index
    %c0_6 = arith.constant 0 : index
    %c0_7 = arith.constant 0 : index
    %7 = vector.load %arg6[%c0_5, %c0_6, %c0_7] : memref<1x2x128xf32, #tpu.memory_space<vmem>>, vector<1x2x128xf32>
    %8 = vector.shape_cast %7 : vector<1x2x128xf32> to vector<2x128xf32>
    %9 = vector.shape_cast %6 : vector<2x128xf32> to vector<2x1x128xf32>
    %10 = vector.shape_cast %9 : vector<2x1x128xf32> to vector<2x1x128xf32>
    %11 = vector.broadcast %10 : vector<2x1x128xf32> to vector<2x4x128xf32>
    %12 = vector.shape_cast %11 : vector<2x4x128xf32> to vector<8x128xf32>
    %13 = vector.shape_cast %8 : vector<2x128xf32> to vector<2x1x128xf32>
    %14 = vector.shape_cast %13 : vector<2x1x128xf32> to vector<2x1x128xf32>
    %15 = vector.broadcast %14 : vector<2x1x128xf32> to vector<2x4x128xf32>
    %16 = vector.shape_cast %15 : vector<2x4x128xf32> to vector<8x128xf32>
    %c0_i32_8 = arith.constant 0 : i32
    %17 = vector.broadcast %c0_i32_8 : i32 to vector<8x128xi32>
    %18 = arith.shrui %4, %17 : vector<8x128xi32>
    %c15_i32 = arith.constant 15 : i32
    %19 = vector.broadcast %c15_i32 : i32 to vector<8x128xi32>
    %20 = arith.andi %18, %19 : vector<8x128xi32>
    %21 = arith.uitofp %20 : vector<8x128xi32> to vector<8x128xf32>
    %22 = arith.mulf %21, %12 : vector<8x128xf32>
    %23 = arith.subf %22, %16 : vector<8x128xf32>
    %c4_i32 = arith.constant 4 : i32
    %24 = vector.broadcast %c4_i32 : i32 to vector<8x128xi32>
    %25 = arith.shrui %4, %24 : vector<8x128xi32>
    %c15_i32_9 = arith.constant 15 : i32
    %26 = vector.broadcast %c15_i32_9 : i32 to vector<8x128xi32>
    %27 = arith.andi %25, %26 : vector<8x128xi32>
    %28 = arith.uitofp %27 : vector<8x128xi32> to vector<8x128xf32>
    %29 = arith.mulf %28, %12 : vector<8x128xf32>
    %30 = arith.subf %29, %16 : vector<8x128xf32>
    %c8_i32 = arith.constant 8 : i32
    %31 = vector.broadcast %c8_i32 : i32 to vector<8x128xi32>
    %32 = arith.shrui %4, %31 : vector<8x128xi32>
    %c15_i32_10 = arith.constant 15 : i32
    %33 = vector.broadcast %c15_i32_10 : i32 to vector<8x128xi32>
    %34 = arith.andi %32, %33 : vector<8x128xi32>
    %35 = arith.uitofp %34 : vector<8x128xi32> to vector<8x128xf32>
    %36 = arith.mulf %35, %12 : vector<8x128xf32>
    %37 = arith.subf %36, %16 : vector<8x128xf32>
    %c12_i32 = arith.constant 12 : i32
    %38 = vector.broadcast %c12_i32 : i32 to vector<8x128xi32>
    %39 = arith.shrui %4, %38 : vector<8x128xi32>
    %c15_i32_11 = arith.constant 15 : i32
    %40 = vector.broadcast %c15_i32_11 : i32 to vector<8x128xi32>
    %41 = arith.andi %39, %40 : vector<8x128xi32>
    %42 = arith.uitofp %41 : vector<8x128xi32> to vector<8x128xf32>
    %43 = arith.mulf %42, %12 : vector<8x128xf32>
    %44 = arith.subf %43, %16 : vector<8x128xf32>
    %c16_i32 = arith.constant 16 : i32
    %45 = vector.broadcast %c16_i32 : i32 to vector<8x128xi32>
    %46 = arith.shrui %4, %45 : vector<8x128xi32>
    %c15_i32_12 = arith.constant 15 : i32
    %47 = vector.broadcast %c15_i32_12 : i32 to vector<8x128xi32>
    %48 = arith.andi %46, %47 : vector<8x128xi32>
    %49 = arith.uitofp %48 : vector<8x128xi32> to vector<8x128xf32>
    %50 = arith.mulf %49, %12 : vector<8x128xf32>
    %51 = arith.subf %50, %16 : vector<8x128xf32>
    %c20_i32 = arith.constant 20 : i32
    %52 = vector.broadcast %c20_i32 : i32 to vector<8x128xi32>
    %53 = arith.shrui %4, %52 : vector<8x128xi32>
    %c15_i32_13 = arith.constant 15 : i32
    %54 = vector.broadcast %c15_i32_13 : i32 to vector<8x128xi32>
    %55 = arith.andi %53, %54 : vector<8x128xi32>
    %56 = arith.uitofp %55 : vector<8x128xi32> to vector<8x128xf32>
    %57 = arith.mulf %56, %12 : vector<8x128xf32>
    %58 = arith.subf %57, %16 : vector<8x128xf32>
    %c24_i32 = arith.constant 24 : i32
    %59 = vector.broadcast %c24_i32 : i32 to vector<8x128xi32>
    %60 = arith.shrui %4, %59 : vector<8x128xi32>
    %c15_i32_14 = arith.constant 15 : i32
    %61 = vector.broadcast %c15_i32_14 : i32 to vector<8x128xi32>
    %62 = arith.andi %60, %61 : vector<8x128xi32>
    %63 = arith.uitofp %62 : vector<8x128xi32> to vector<8x128xf32>
    %64 = arith.mulf %63, %12 : vector<8x128xf32>
    %65 = arith.subf %64, %16 : vector<8x128xf32>
    %c28_i32 = arith.constant 28 : i32
    %66 = vector.broadcast %c28_i32 : i32 to vector<8x128xi32>
    %67 = arith.shrui %4, %66 : vector<8x128xi32>
    %c15_i32_15 = arith.constant 15 : i32
    %68 = vector.broadcast %c15_i32_15 : i32 to vector<8x128xi32>
    %69 = arith.andi %67, %68 : vector<8x128xi32>
    %70 = arith.uitofp %69 : vector<8x128xi32> to vector<8x128xf32>
    %71 = arith.mulf %70, %12 : vector<8x128xf32>
    %72 = arith.subf %71, %16 : vector<8x128xf32>
    %73 = tpu.concatenate %23, %30, %37, %44, %51, %58, %65, %72 in 0 : vector<8x128xf32>, vector<8x128xf32>, vector<8x128xf32>, vector<8x128xf32>, vector<8x128xf32>, vector<8x128xf32>, vector<8x128xf32>, vector<8x128xf32> -> vector<64x128xf32>
    %c0_16 = arith.constant 0 : index
    %c0_17 = arith.constant 0 : index
    %74 = vector.load %arg8[%c0_16, %c0_17] : memref<8x128xf32, #tpu.memory_space<vmem>>, vector<8x128xf32>
    %c0_18 = arith.constant 0 : index
    %c0_19 = arith.constant 0 : index
    %75 = vector.load %arg3[%c0_18, %c0_19] : memref<8x64xf32, #tpu.memory_space<vmem>>, vector<8x64xf32>
    %cst = arith.constant dense<0.000000e+00> : vector<8x128xf32>
    %76 = tpu.matmul %75, %73, %cst {dimension_numbers = #tpu.dot_dimension_numbers<[1], [0], [0], [1], [0, 0, 1, 1], [], []>} : vector<8x64xf32>, vector<64x128xf32>, vector<8x128xf32> -> vector<8x128xf32>
    %77 = arith.addf %74, %76 : vector<8x128xf32>
    %c0_20 = arith.constant 0 : index
    %c0_21 = arith.constant 0 : index
    %78 = vector.load %arg8[%c0_20, %c0_21] : memref<8x128xf32, #tpu.memory_space<vmem>>, vector<8x128xf32>
    tpu.vector_store %arg8[%c0_20, %c0_21], %77 {strides = array<i32>} : memref<8x128xf32, #tpu.memory_space<vmem>>, vector<8x128xf32>,
    %c0_i32_22 = arith.constant 0 : i32
    %79 = arith.cmpi eq, %arg2, %c0_i32_22 : i32
    %80 = arith.extui %79 : i1 to i32
    %c0_i32_23 = arith.constant 0 : i32
    %81 = arith.cmpi ne, %80, %c0_i32_23 : i32
    scf.if %81 {
      %c0_24 = arith.constant 0 : index
      %c0_25 = arith.constant 0 : index
      %82 = vector.load %arg8[%c0_24, %c0_25] : memref<8x128xf32, #tpu.memory_space<vmem>>, vector<8x128xf32>
      %c0_26 = arith.constant 0 : index
      %c0_27 = arith.constant 0 : index
      %83 = vector.load %arg7[%c0_26, %c0_27] : memref<8x128xf32, #tpu.memory_space<vmem>>, vector<8x128xf32>
      tpu.vector_store %arg7[%c0_26, %c0_27], %82 {strides = array<i32>} : memref<8x128xf32, #tpu.memory_space<vmem>>, vector<8x128xf32>,
    } else {
    }
    return
  }
  func.func @transform_0(%arg0: i32, %arg1: i32, %arg2: i32) -> (i32, i32) {
    %c0_i32 = arith.constant 0 : i32
    return %arg1, %arg2 : i32, i32
  }
  func.func @transform_1(%arg0: i32, %arg1: i32, %arg2: i32) -> (i32, i32) {
    %c0_i32 = arith.constant 0 : i32
    return %arg2, %arg0 : i32, i32
  }
  func.func @transform_2(%arg0: i32, %arg1: i32, %arg2: i32) -> (i32, i32, i32) {
    %c0_i32 = arith.constant 0 : i32
    %c0_i32_0 = arith.constant 0 : i32
    return %arg2, %c0_i32, %arg0 : i32, i32, i32
  }
  func.func @transform_3(%arg0: i32, %arg1: i32, %arg2: i32) -> (i32, i32, i32) {
    %c0_i32 = arith.constant 0 : i32
    %c0_i32_0 = arith.constant 0 : i32
    return %arg2, %c0_i32, %arg0 : i32, i32, i32
  }
  func.func @transform_4(%arg0: i32, %arg1: i32, %arg2: i32) -> (i32, i32) {
    %c0_i32 = arith.constant 0 : i32
    return %arg1, %arg0 : i32, i32
  }
}

</mosaic_0001>

<bundles_post_ra>
// kernel: tpu_custom_call.1
= control target key start
LH: loop header
LB: loop body
LE: loop exit
PB: predicated region body
PF: predicated region fallthrough
CT: control target
= control target key end

     0   :  { %9 = vsyncpa [#allocation4], 0  ;;  %s525_s0 = inlined_call_operand.hbm [shape: f32[8,64], index: 0, kind: input, shape index: {}]   ;;  %s526_s1 = inlined_call_operand.hbm [shape: s32[8,128], index: 1, kind: input, shape index: {}]   ;;  %s527_s2 = inlined_call_operand.vmem [shape: f32[1,2,128], index: 2, kind: input, shape index: {}]   ;;  %s528_s3 = inlined_call_operand.vmem [shape: f32[1,2,128], index: 3, kind: input, shape index: {}]   ;;  %s529_s4 = inlined_call_operand.hbm [shape: f32[8,128], index: 4, kind: output, shape index: {}]  }
   0x1   :  { %10 = vsyncpa [#allocation7], 0 }
   0x2   :  { %11 = vsyncpa [#allocation5], 0  ;;  %s417_s15 = smov [#allocation3]   ;;  %s418_s17 = smov [#allocation6]  }
   0x3   :  { %s18_s16 = sshll.u32 %s417_s15, 4  ;;  %s28_s18 = sshll.u32 %s418_s17, 4  ;;  %s19_s16 = int_to_ptr.vmem [resolvable:$true] %s18_s16  ;;  %s29_s18 = int_to_ptr.vmem [resolvable:$true] %s28_s18 }
   0x4   :  { %s345_s21 = scalar_lea.hbm %s525_s0, 128 }
   0x5   :  { %p346_p0 = scmp.ne.s32.totalorder %s525_s0, %s345_s21  ;;  %p349_p1 = scmp.lt.u32.totalorder %s345_s21, %s525_s0 }
   0x7   :  { %p351_p2 = pnand %p349_p1, %p346_p0 }
   0x9   :  { %354 = shalt.err (!%p351_p2)
}
   0xa   :  { %s355_s26 = scalar_lea.vmem %s19_s16, 128  ;;  %p360_p4 = scmp.lt.s32.totalorder %s19_s16, %s19_s16 }
   0xb   :  { %p356_p3 = scmp.ne.s32.totalorder %s19_s16, %s355_s26  ;;  %p361_p5 = scmp.lt.s32.totalorder %s355_s26, %s355_s26 }
   0xd   :  { %p362_p6 = por %p361_p5, %p360_p4 }
   0xf   :  { %p363_p7 = pnand %p362_p6, %p356_p3 }
  0x11   :  { %366 = shalt.err (!%p363_p7)
}
  0x12   :  { %21 = dma.hbm_to_vmem [thread:$0]  %s525_s0, 128, %s19_s16, [#allocation4]  }
  0x13   :  { %s367_s5 = scalar_lea.hbm %s526_s1, 128 }
  0x14   :  { %p368_p8 = scmp.ne.s32.totalorder %s526_s1, %s367_s5  ;;  %p371_p9 = scmp.lt.u32.totalorder %s367_s5, %s526_s1 }
  0x16   :  { %p373_p10 = pnand %p371_p9, %p368_p8 }
  0x18   :  { %376 = shalt.err (!%p373_p10)
}
  0x19   :  { %s377_s10 = scalar_lea.vmem %s29_s18, 128  ;;  %p382_p12 = scmp.lt.s32.totalorder %s29_s18, %s29_s18 }
  0x1a   :  { %p378_p11 = scmp.ne.s32.totalorder %s29_s18, %s377_s10  ;;  %p383_p13 = scmp.lt.s32.totalorder %s377_s10, %s377_s10 }
  0x1c   :  { %p384_p0 = por %p383_p13, %p382_p12 }
  0x1e   :  { %p385_p1 = pnand %p384_p0, %p378_p11 }
  0x20   :  { %388 = shalt.err (!%p385_p1)
}
  0x21   :  { %31 = dma.hbm_to_vmem [thread:$0]  %s526_s1, 128, %s29_s18, [#allocation7]  }
  0x22   :  { %411 = dma.done.wait [#allocation4], 128  }
  0x23   :  { %412 = vsyncadd [#allocation4], 4294967168 }
  0x24   :  { %413 = dma.done.wait [#allocation7], 128  }
  0x25   :  { %414 = vsyncadd [#allocation7], 4294967168  ;;  %v62_v0 = vlaneseq  ;;  %v419_v1 = vmov 0.0|0.0   ;;  %v420_v2 = vmov 1966171168   ;;  %vm421_vm0 = vmmov 0  }
  0x26   :  { %326 = vmatprep.subr.bf16.mxu0 %v419_v1  ;;  %v60_v3 = vunpack.c.l.s4 %v420_v2  ;;  %v422_v5 = vmov 0.0   ;;  %v474_v9 = vld [vmem:[#allocation6] sm:$0xff]  ;;  %v294_v10 = vld.sshfl [vmem:[%s527_s2] sm:$0x11 pattern:$0x75316420] }
  0x27   :  { %v63_v4 = vshrl.u32 %v62_v0, 7  ;;  %323 = vmatprep.mubr.msk.f32.mxu0 %vm421_vm0, %v422_v5  ;;  %v295_v11 = vld.sshfl [vmem:[%s528_s3] sm:$0x11 pattern:$0x75316420]  ;;  %v58_v12 = vcombine.high %v294_v10, %v294_v10  ;;  %v112_v14 = vand.u32 15, %v474_v9 }
  0x28   :  { %v61_v6 = vunpack.c.0.s8 %v60_v3  ;;  %v125_v15 = vshrl.u32 %v474_v9, 4  ;;  %v89_v16 = vcombine.high %v295_v11, %v295_v11  ;;  %v135_v18 = vshrl.u32 %v474_v9, 8  ;;  %s423_s2 = smov [#allocation8]  }
  0x29   :  { %v75_v8 = vsub.s32 0, %v63_v4  ;;  %v145_v19 = vshrl.u32 %v474_v9, 12  ;;  %v113_v22 = vshrl.u32 %v112_v14, 16  ;;  %v114_v23 = vand.u32 65535, %v112_v14  ;;  %s284_s3 = sshll.u32 %s423_s2, 4  ;;  %s285_s3 = int_to_ptr.vmem [resolvable:$true] %s284_s3 }
  0x2a   :  { %v64_v7 = vsub.s32 %v61_v6, %v63_v4  ;;  %v126_v26 = vand.u32 15, %v125_v15  ;;  %v136_v27 = vand.u32 15, %v135_v18  ;;  %v155_v50 = vshrl.u32 %v474_v9, 16  ;;  %s389_s15 = scalar_lea.vmem %s285_s3, 128  ;;  %p394_p3 = scmp.lt.s32.totalorder %s285_s3, %s285_s3 }
  0x2b   :  { %v115_v29 = vcvt.s32.f32 %v113_v22  ;;  %v117_v30 = vcvt.s32.f32 %v114_v23  ;;  %v146_v31 = vand.u32 15, %v145_v19  ;;  %v165_v51 = vshrl.u32 %v474_v9, 20  ;;  %p390_p2 = scmp.ne.s32.totalorder %s285_s3, %s389_s15  ;;  %p395_p4 = scmp.lt.s32.totalorder %s389_s15, %s389_s15 }
  0x2c   :  { %v65_v13 = vrot.slane %v294_v10, %v64_v7  ;;  %v96_v17 = vrot.slane %v295_v11, %v64_v7  ;;  %v72_v20 = vrot.slane %v58_v12, %v64_v7  ;;  %v103_v24 = vrot.slane %v89_v16, %v64_v7 }
  0x2d   :  { %v127_v33 = vshrl.u32 %v126_v26, 16  ;;  %v128_v34 = vand.u32 65535, %v126_v26  ;;  %v137_v35 = vshrl.u32 %v136_v27, 16  ;;  %v116_v36 = vmul.f32 65536.0, %v115_v29  ;;  %p396_p5 = por %p395_p4, %p394_p3 }
  0x2e   :  { %v76_v21 = vrot.slane %v65_v13, %v75_v8  ;;  %v107_v25 = vrot.slane %v96_v17, %v75_v8  ;;  %v80_v28 = vrot.slane %v72_v20, %v75_v8  ;;  %v111_v32 = vrot.slane %v103_v24, %v75_v8 }
  0x2f   :  { %v138_v38 = vand.u32 65535, %v136_v27  ;;  %v147_v39 = vshrl.u32 %v146_v31, 16  ;;  %v129_v41 = vcvt.s32.f32 %v127_v33  ;;  %v131_v42 = vcvt.s32.f32 %v128_v34  ;;  %p397_p6 = pnand %p396_p5, %p390_p2 }
  0x30   :  { %v486_v37 = vcombine.low %v76_v21, %v80_v28  ;;  %v488_v40 = vcombine.low %v107_v25, %v111_v32  ;;  %v139_v43 = vcvt.s32.f32 %v137_v35  ;;  %v118_v44 = vadd.f32 %v117_v30, %v116_v36 }
  0x31   :  { %v141_v45 = vcvt.s32.f32 %v138_v38  ;;  %v148_v46 = vand.u32 65535, %v146_v31  ;;  %v149_v47 = vcvt.s32.f32 %v147_v39  ;;  %v130_v48 = vmul.f32 65536.0, %v129_v41 }
  0x32   :  { %v140_v49 = vmul.f32 65536.0, %v139_v43  ;;  %v121_v52 = vmul.f32 %v486_v37, %v118_v44  ;;  %v175_v55 = vshrl.u32 %v474_v9, 24  ;;  %v156_v58 = vand.u32 15, %v155_v50 }
  0x33   :  { %v150_v53 = vmul.f32 65536.0, %v149_v47  ;;  %v151_v54 = vcvt.s32.f32 %v148_v46  ;;  %v132_v56 = vadd.f32 %v131_v42, %v130_v48  ;;  %v166_v59 = vand.u32 15, %v165_v51 }
  0x34   :  { %v142_v57 = vadd.f32 %v141_v45, %v140_v49  ;;  %v124_v60 = vsub.f32 %v121_v52, %v488_v40  ;;  %v176_v62 = vand.u32 15, %v175_v55  ;;  %v296_v63 = vshrl.u32 %v474_v9, 28  ;;  %v196_v45 = vld [vmem:[#allocation3] sm:$0xff] }
  0x35   :  { %v152_v61 = vadd.f32 %v151_v54, %v150_v53  ;;  %v133_v0 = vmul.f32 %v132_v56, %v486_v37  ;;  %v157_v3 = vshrl.u32 %v156_v58, 16  ;;  %v158_v4 = vand.u32 65535, %v156_v58 }
  0x36   :  { %v143_v2 = vmul.f32 %v142_v57, %v486_v37  ;;  %v167_v6 = vshrl.u32 %v166_v59, 16  ;;  %v168_v7 = vand.u32 65535, %v166_v59  ;;  %v177_v8 = vshrl.u32 %v176_v62, 16 }
  0x37   :  { %v153_v5 = vmul.f32 %v152_v61, %v486_v37  ;;  %v134_v10 = vsub.f32 %v133_v0, %v488_v40  ;;  %v159_v12 = vcvt.s32.f32 %v157_v3  ;;  %v161_v13 = vcvt.s32.f32 %v158_v4 }
  0x38   :  { %v144_v11 = vsub.f32 %v143_v2, %v488_v40  ;;  %v169_v9 = vcvt.s32.f32 %v167_v6  ;;  %v171_v15 = vcvt.s32.f32 %v168_v7  ;;  %v178_v16 = vand.u32 65535, %v176_v62 }
  0x39   :  { %v154_v14 = vsub.f32 %v153_v5, %v488_v40  ;;  %v327_v17 = vpack.c.bf16 %v134_v10, %v124_v60  ;;  %v160_v18 = vmul.f32 65536.0, %v159_v12  ;;  %v179_v19 = vcvt.s32.f32 %v177_v8 }
  0x3a   :  { %v187_v20 = vshrl.u32 %v296_v63, 16  ;;  %v170_v21 = vmul.f32 65536.0, %v169_v9  ;;  %v181_v22 = vcvt.s32.f32 %v178_v16  ;;  %v188_v23 = vand.u32 65535, %v296_v63 }
  0x3b   :  { %328 = vmatpush3.bf16.msra.mxu0 %v327_v17  ;;  %v330_v24 = vpack.c.bf16 %v154_v14, %v144_v11  ;;  %v162_v25 = vadd.f32 %v161_v13, %v160_v18  ;;  %v180_v26 = vmul.f32 65536.0, %v179_v19  ;;  %vm197_vm1 = vcmask 523264  }
  0x3c   :  { %v189_v27 = vcvt.s32.f32 %v187_v20  ;;  %329 = vmatprep.subr.bf16.mxu0 %v419_v1  ;;  %v172_v28 = vadd.f32 %v171_v15, %v170_v21  ;;  %v191_v29 = vcvt.s32.f32 %v188_v23 }
  0x3d   :  { %v163_v30 = vmul.f32 %v162_v25, %v486_v37  ;;  %v182_v31 = vadd.f32 %v181_v22, %v180_v26 }
  0x3e   :  { %v190_v32 = vmul.f32 65536.0, %v189_v27  ;;  %v173_v33 = vmul.f32 %v172_v28, %v486_v37 }
  0x3f   :  { %331 = vmatpush3.bf16.msra.mxu0 %v330_v24  ;;  %v164_v34 = vsub.f32 %v163_v30, %v488_v40  ;;  %v183_v35 = vmul.f32 %v182_v31, %v486_v37 }
  0x40   :  { %v192_v36 = vadd.f32 %v191_v29, %v190_v32  ;;  %332 = vmatprep.subr.bf16.mxu0 %v419_v1  ;;  %v174_v38 = vsub.f32 %v173_v33, %v488_v40 }
  0x41   :  { %v184_v39 = vsub.f32 %v183_v35, %v488_v40 }
  0x42   :  { %v193_v41 = vmul.f32 %v192_v36, %v486_v37  ;;  %v333_v42 = vpack.c.bf16 %v174_v38, %v164_v34 }
  0x44   :  { %v194_v43 = vsub.f32 %v193_v41, %v488_v40  ;;  %334 = vmatpush3.bf16.msra.mxu0 %v333_v42 }
  0x45   :  { %335 = vmatprep.subr.bf16.mxu0 %v419_v1 }
  0x46   :  { %v336_v44 = vpack.c.bf16 %v194_v43, %v184_v39 }
  0x48   :  { %337 = vmatpush3.bf16.msra.mxu0 %v336_v44 }
  0x4b   :  { %324 = vmatmul.mubr.msk.f32.vlgmr.msra.gmra.mrb[0].mxu0 %vm197_vm1, %v196_v45 }
 0x11e   :  { %v267_v46 = vpop.f32.mrb[0].mxu0 }
 0x11f   :  { %277 = vst [vmem:[#allocation8] sm:$0xff] %v267_v46  ;;  %v325_v47 = vpop.f32.mrb[1].mxu0 }
 0x120   :  { %400 = shalt.err (!%p397_p6)
}
 0x121   :  { %s401_s18 = scalar_lea.hbm %s529_s4, 128 }
 0x122   :  { %p402_p7 = scmp.ne.s32.totalorder %s529_s4, %s401_s18  ;;  %p405_p8 = scmp.lt.u32.totalorder %s401_s18, %s529_s4 }
 0x124   :  { %p407_p9 = pnand %p405_p8, %p402_p7 }
 0x126   :  { %410 = shalt.err (!%p407_p9)
}
 0x127   :  { %287 = dma.vmem_to_hbm [thread:$0]  %s285_s3, 128, %s529_s4, [#allocation5]  }
 0x128   :  { %415 = dma.done.wait [#allocation5], 128  }
 0x129   :  { %416 = vsyncadd [#allocation5], 4294967168 }
 0x12a   :  { %291 = vsyncpa [#allocation4], 1 }
 0x12b   :  { %292 = vsyncpa [#allocation7], 1 }
 0x12c   :  { %293 = vsyncpa [#allocation5], 1 }

</bundles_post_ra>
